<compile_context>
chip_gen: v6e
topology: v6e:2x2x1
jax: 0.10.0
libtpu: 0.0.40
codegen_flags: <defaults>
</compile_context>

<pallas_src>
import functools

import jax
import jax.numpy as jnp
from jax.experimental import pallas as pl
from jax.experimental.pallas import tpu as pltpu


LANE = 128     # feature-dim padding granularity (lane width)


def _round_up(x, m):
    return (x + m - 1) // m * m


def _pad_to(a, shape):
    return jnp.pad(a, [(0, t - s) for s, t in zip(a.shape, shape)])


# ----------------------------------------------------------------------------
# Hardware introspection (with safe fallbacks).
# ----------------------------------------------------------------------------
def _tpu_vmem_capacity():
    try:
        return int(pltpu.get_tpu_info().vmem_capacity_bytes)
    except Exception:
        return 128 * 1024 * 1024


def _device_kind():
    try:
        return jax.devices()[0].device_kind.lower()
    except Exception:
        return ""


def _tile_sizes(n):
    """(TQ, TK) per generation, clamped for short sequences."""
    kind = _device_kind()
    if ("v6" in kind) or ("v7" in kind) or ("7x" in kind):
        tq_pref, tk_pref = 256, 256      # 256-wide MXU: fill QK^T output N dim
    elif ("v5 lite" in kind) or ("v5e" in kind) or ("v5lite" in kind):
        tq_pref, tk_pref = 128, 512      # 128-wide MXU; fewer kv steps (VPU/overhead)
    else:
        tq_pref, tk_pref = 128, 128      # conservative default
    cap = _round_up(n, LANE)
    return min(tq_pref, cap), min(tk_pref, cap)


# ----------------------------------------------------------------------------
# Kernel 1: K / V projection for the (single observable) layer.
# One fused weight (dp, hkp+hvp) -> one wide MXU matmul produces K and V.
# ----------------------------------------------------------------------------
def _kv_projection_kernel(x_ref, wkv_ref, bkv_ref, k_ref, v_ref, *, hkp):
    x = x_ref[0].astype(jnp.bfloat16)                                  # (TK, dp)
    kv = jnp.dot(x, wkv_ref[...], preferred_element_type=jnp.float32) + bkv_ref[...]
    k_ref[0] = kv[:, :hkp].astype(jnp.bfloat16)
    v_ref[0] = kv[:, hkp:].astype(jnp.bfloat16)


def _kv_projection(x_p, wkv, bkv, hkp, hvp, tk, vmem_limit):
    d, np_, dp = x_p.shape
    st = np_ // tk

    kernel = functools.partial(_kv_projection_kernel, hkp=hkp)

    flops = 2 * d * np_ * dp * (hkp + hvp)
    bytes_accessed = (4 * d * np_ * dp                 # x (f32), read once
                      + 2 * dp * (hkp + hvp)           # fused weight (bf16), resident
                      + 4 * (hkp + hvp)                # bias
                      + 2 * d * np_ * (hkp + hvp))     # K, V outputs (bf16)

    return pl.pallas_call(
        kernel,
        out_shape=[jax.ShapeDtypeStruct((d, np_, hkp), jnp.bfloat16),
                   jax.ShapeDtypeStruct((d, np_, hvp), jnp.bfloat16)],
        grid_spec=pltpu.PrefetchScalarGridSpec(
            num_scalar_prefetch=0,
            grid=(d, st),
            in_specs=[
                pl.BlockSpec((1, tk, dp), lambda b, s: (b, s, 0)),
                pl.BlockSpec((dp, hkp + hvp), lambda b, s: (0, 0)),
                pl.BlockSpec((1, hkp + hvp), lambda b, s: (0, 0)),
            ],
            out_specs=[
                pl.BlockSpec((1, tk, hkp), lambda b, s: (b, s, 0)),
                pl.BlockSpec((1, tk, hvp), lambda b, s: (b, s, 0)),
            ],
        ),
        compiler_params=pltpu.CompilerParams(
            dimension_semantics=("parallel", "parallel"),
            vmem_limit_bytes=vmem_limit),
        cost_estimate=pl.CostEstimate(flops=int(flops), transcendentals=0,
                                      bytes_accessed=int(bytes_accessed)),
    )(x_p, wkv, bkv)


# ----------------------------------------------------------------------------
# Kernel 2: fused encoder layer — flash attention + unify + LN1 + FFN + LN2.
# Grid = (batch, q_tiles, kv_tiles); all weights are VMEM-resident.
# ----------------------------------------------------------------------------
def _layernorm(h, gamma, beta, d_real, pad_cols, eps):
    # Padded feature columns of h are exactly zero, so sum(h) over the padded
    # width equals the sum over the real width.  For the variance we use the
    # cancellation-safe centered form and subtract the exact contribution of
    # the pad_cols zero columns (each contributes mu^2 after centering).
    inv_d = 1.0 / d_real
    mu = jnp.sum(h, axis=-1, keepdims=True) * inv_d
    c = h - mu
    var = (jnp.sum(c * c, axis=-1, keepdims=True) - pad_cols * (mu * mu)) * inv_d
    var = jnp.maximum(var, 0.0)
    return c * jax.lax.rsqrt(var + eps) * gamma + beta


def _encoder_kernel(x_ref, k_ref, v_ref,
                    wq_ref, bq_ref, wu_ref, bu_ref,
                    g1_ref, be1_ref, w1_ref, bf1_ref, w2_ref, bf2_ref,
                    g2_ref, be2_ref,
                    y_ref,
                    q_scr, m_scr, l_scr, acc_scr,
                    *, scale, n_real, d_real, pad_cols, eps, mask_keys):
    ki = pl.program_id(2)
    num_kv = pl.num_programs(2)

    @pl.when(ki == 0)
    def _init():
        # q projection once per (batch, q-tile); fold 1/sqrt(dk) here.
        x = x_ref[0]
        q = jnp.dot(x.astype(jnp.bfloat16), wq_ref[...],
                    preferred_element_type=jnp.float32) + bq_ref[...]
        q_scr[...] = (q * scale).astype(jnp.bfloat16)
        m_scr[...] = jnp.full_like(m_scr, -1e30)
        l_scr[...] = jnp.zeros_like(l_scr)
        acc_scr[...] = jnp.zeros_like(acc_scr)

    k = k_ref[0]                                            # (TK, hqp) bf16
    v = v_ref[0]                                            # (TK, hvp) bf16

    # Scores: contract the last dim of q and k directly (no XLU transpose).
    s = jax.lax.dot_general(q_scr[...], k, (((1,), (1,)), ((), ())),
                            preferred_element_type=jnp.float32)   # (TQ, TK) f32

    def online_softmax(scores):
        m_prev = m_scr[...]
        m_new = jnp.maximum(m_prev, jnp.max(scores, axis=-1, keepdims=True))
        alpha = jnp.exp(m_prev - m_new)
        p = jnp.exp(scores - m_new)
        l_scr[...] = alpha * l_scr[...] + jnp.sum(p, axis=-1, keepdims=True)
        acc_scr[...] = alpha * acc_scr[...] + jnp.dot(
            p.astype(jnp.bfloat16), v, preferred_element_type=jnp.float32)
        m_scr[...] = m_new

    if mask_keys:
        # Sequence padding (n rounded up to a multiple of TK) lives only in the
        # last kv tile, so the iota/compare/select runs only there.
        is_last_kv = ki == num_kv - 1

        @pl.when(is_last_kv)
        def _masked_update():
            col = ki * s.shape[1] + jax.lax.broadcasted_iota(jnp.int32, s.shape, 1)
            online_softmax(jnp.where(col < n_real, s, -1e30))

        @pl.when(jnp.logical_not(is_last_kv))
        def _plain_update():
            online_softmax(s)
    else:
        online_softmax(s)

    @pl.when(ki == num_kv - 1)
    def _finalize():
        x = x_ref[0]
        attn = acc_scr[...] * pl.reciprocal(l_scr[...], approx=True)
        unified = jnp.dot(attn.astype(jnp.bfloat16), wu_ref[...],
                          preferred_element_type=jnp.float32) + bu_ref[...]
        n1 = _layernorm(x + unified, g1_ref[...], be1_ref[...],
                        d_real, pad_cols, eps)
        f = jnp.dot(n1.astype(jnp.bfloat16), w1_ref[...],
                    preferred_element_type=jnp.float32) + bf1_ref[...]
        f = jnp.maximum(f, 0.0)
        f = jnp.dot(f.astype(jnp.bfloat16), w2_ref[...],
                    preferred_element_type=jnp.float32) + bf2_ref[...]
        y_ref[0] = _layernorm(n1 + f, g2_ref[...], be2_ref[...],
                              d_real, pad_cols, eps)


def _encoder_layer(x_p, keys, vals, weights, *, dk, n_real, d_real,
                   tq, tk, vmem_limit, single_buffer_weights):
    (wq, bq, wu, bu, g1, be1, w1, bf1, w2, bf2, g2, be2) = weights
    d, np_, dp = x_p.shape
    hqp = wq.shape[1]
    hvp = wu.shape[0]
    fp = w1.shape[1]
    qt = np_ // tq
    kt = np_ // tk

    kernel = functools.partial(
        _encoder_kernel,
        scale=1.0 / float(dk) ** 0.5,
        n_real=n_real, d_real=float(d_real),
        pad_cols=float(dp - d_real), eps=1e-5,
        mask_keys=(n_real < np_))

    def resident(shape):
        # Weights never change over the grid -> constant index_map keeps them
        # VMEM-resident (DMA'd once).  On low-VMEM chips (v7x) request single
        # buffering so the FFN matrices are not double-buffered.
        index_map = lambda b, qi, ki: (0,) * len(shape)
        if single_buffer_weights:
            try:
                return pl.BlockSpec(shape, index_map, pipeline_mode=pl.Buffered(1))
            except Exception:
                pass
        return pl.BlockSpec(shape, index_map)

    flops = d * (2 * np_ * dp * hqp                 # q projection
                 + 2 * np_ * np_ * (hqp + hvp)      # scores + p@v
                 + 2 * np_ * hvp * dp               # unify
                 + 4 * np_ * dp * fp)               # FFN (two matmuls)
    transcend = d * np_ * np_                       # softmax exp
    w_bytes = 2 * (dp * hqp + hvp * dp + 2 * dp * fp) + 4 * (hqp + 5 * dp + fp)
    bytes_accessed = (4 * d * np_ * dp              # x (f32)
                      + 2 * d * np_ * (hqp + hvp)   # K, V (bf16)
                      + w_bytes                     # weights, read once
                      + 4 * d * np_ * dp)           # y writeback (f32)

    return pl.pallas_call(
        kernel,
        out_shape=jax.ShapeDtypeStruct((d, np_, dp), jnp.float32),
        grid_spec=pltpu.PrefetchScalarGridSpec(
            num_scalar_prefetch=0,
            grid=(d, qt, kt),
            in_specs=[
                pl.BlockSpec((1, tq, dp), lambda b, qi, ki: (b, qi, 0)),
                pl.BlockSpec((1, tk, hqp), lambda b, qi, ki: (b, ki, 0)),
                pl.BlockSpec((1, tk, hvp), lambda b, qi, ki: (b, ki, 0)),
                resident((dp, hqp)), resident((1, hqp)),    # Wq, bq
                resident((hvp, dp)), resident((1, dp)),     # unify
                resident((1, dp)), resident((1, dp)),       # LayerNorm1 gamma/beta
                resident((dp, fp)), resident((1, fp)),      # FFN linear 1
                resident((fp, dp)), resident((1, dp)),      # FFN linear 2
                resident((1, dp)), resident((1, dp)),       # LayerNorm2 gamma/beta
            ],
            out_specs=pl.BlockSpec((1, tq, dp), lambda b, qi, ki: (b, qi, 0)),
            scratch_shapes=[
                pltpu.VMEM((tq, hqp), jnp.bfloat16),   # scaled q (per q-tile)
                pltpu.VMEM((tq, 1), jnp.float32),      # running max
                pltpu.VMEM((tq, 1), jnp.float32),      # running sum
                pltpu.VMEM((tq, hvp), jnp.float32),    # attention accumulator
            ],
        ),
        compiler_params=pltpu.CompilerParams(
            dimension_semantics=("parallel", "parallel", "arbitrary"),
            vmem_limit_bytes=vmem_limit),
        cost_estimate=pl.CostEstimate(flops=int(flops),
                                      transcendentals=int(transcend),
                                      bytes_accessed=int(bytes_accessed)),
    )(x_p, keys, vals,
      wq, bq, wu, bu, g1, be1, w1, bf1, w2, bf2, g2, be2)


# ----------------------------------------------------------------------------
# Public wrapper: pad to lane-dense sizes, run both kernels, slice back.
# ----------------------------------------------------------------------------
def transformer_encoder(x, params_list, *, dk, return_keys_and_values=False):
    d, n, dmodel = x.shape

    # The PyTorch forward never feeds y back into x, so every stacked encoder
    # reads the ORIGINAL x and only the last layer's y / keys / values are
    # observable.  Computing only the last layer is bit-identical to running
    # the whole stack.
    p = params_list[-1]
    hdq = p["wq"].shape[1]
    hdk = p["wk"].shape[1]
    hdv = p["wv"].shape[1]
    ff = p["w1"].shape[1]
    assert hdq == hdk, "scores = q @ k^T requires heads*dq == heads*dk"

    tq, tk = _tile_sizes(n)
    vmem_cap = _tpu_vmem_capacity()
    vmem_limit = (vmem_cap * 3) // 4
    single_buffer_weights = vmem_cap < 100 * 1024 * 1024    # v7x (64 MiB VMEM)

    dp = _round_up(dmodel, LANE)
    hqp = _round_up(hdq, LANE)
    hvp = _round_up(hdv, LANE)
    fp = _round_up(ff, LANE)
    np_ = _round_up(n, max(tq, tk))
    assert np_ % tq == 0 and np_ % tk == 0 and (np_ - n) < tk

    x_p = _pad_to(x.astype(jnp.float32), (d, np_, dp))

    bf16 = jnp.bfloat16
    f32 = jnp.float32
    wq = _pad_to(p["wq"], (dp, hqp)).astype(bf16)
    wu = _pad_to(p["wu"], (hvp, dp)).astype(bf16)
    w1 = _pad_to(p["w1"], (dp, fp)).astype(bf16)
    w2 = _pad_to(p["w2"], (fp, dp)).astype(bf16)
    wkv = jnp.concatenate([_pad_to(p["wk"], (dp, hqp)),
                           _pad_to(p["wv"], (dp, hvp))], axis=1).astype(bf16)
    bq = _pad_to(p["bq"], (1, hqp)).astype(f32)
    bkv = jnp.concatenate([_pad_to(p["bk"], (1, hqp)),
                           _pad_to(p["bv"], (1, hvp))], axis=1).astype(f32)
    bu = _pad_to(p["bu"], (1, dp)).astype(f32)
    bf1 = _pad_to(p["bf1"], (1, fp)).astype(f32)
    bf2 = _pad_to(p["bf2"], (1, dp)).astype(f32)
    g1 = _pad_to(p["g1"], (1, dp)).astype(f32)
    be1 = _pad_to(p["be1"], (1, dp)).astype(f32)
    g2 = _pad_to(p["g2"], (1, dp)).astype(f32)
    be2 = _pad_to(p["be2"], (1, dp)).astype(f32)

    keys_p, vals_p = _kv_projection(x_p, wkv, bkv, hqp, hvp, tk, vmem_limit)
    y_p = _encoder_layer(
        x_p, keys_p, vals_p,
        (wq, bq, wu, bu, g1, be1, w1, bf1, w2, bf2, g2, be2),
        dk=dk, n_real=n, d_real=dmodel, tq=tq, tk=tk,
        vmem_limit=vmem_limit, single_buffer_weights=single_buffer_weights)

    y = y_p[:, :n, :dmodel]
    if not return_keys_and_values:
        return y
    keys = keys_p[:, :n, :hdk].astype(jnp.float32)
    vals = vals_p[:, :n, :hdv].astype(jnp.float32)
    return y, keys, vals


# ----------------------------------------------------------------------------
# Deterministic parameter init (PyTorch nn.Linear-style uniform(+-1/sqrt(fan))).
# ----------------------------------------------------------------------------
def init_params(key, dmodel, dq, dk, dv, heads, feedforward, num_encoders):
    def linear(key, fan_in, fan_out):
        k1, k2 = jax.random.split(key)
        bound = 1.0 / (fan_in ** 0.5)
        w = jax.random.uniform(k1, (fan_in, fan_out), jnp.float32, -bound, bound)
        b = jax.random.uniform(k2, (1, fan_out), jnp.float32, -bound, bound)
        return w, b

    params_list = []
    for _ in range(num_encoders):
        keys = jax.random.split(key, 7)
        key = keys[-1]
        wq, bq = linear(keys[0], dmodel, heads * dq)
        wk, bk = linear(keys[1], dmodel, heads * dk)
        wv, bv = linear(keys[2], dmodel, heads * dv)
        wu, bu = linear(keys[3], heads * dv, dmodel)
        w1, bf1 = linear(keys[4], dmodel, feedforward)
        w2, bf2 = linear(keys[5], feedforward, dmodel)
        params_list.append(dict(
            wq=wq, bq=bq, wk=wk, bk=bk, wv=wv, bv=bv, wu=wu, bu=bu,
            g1=jnp.ones((1, dmodel), jnp.float32),
            be1=jnp.zeros((1, dmodel), jnp.float32),
            w1=w1, bf1=bf1, w2=w2, bf2=bf2,
            g2=jnp.ones((1, dmodel), jnp.float32),
            be2=jnp.zeros((1, dmodel), jnp.float32),
        ))
    return params_list


# ----------------------------------------------------------------------------
# Pure-JAX reference (mirrors the kernel's bf16 matmul operands) for checking.
# ----------------------------------------------------------------------------
def _ref_dot(a, b):
    return jnp.dot(a.astype(jnp.bfloat16), b.astype(jnp.bfloat16),
                   preferred_element_type=jnp.float32)


def reference_layer(x, p, dk):
    q = (_ref_dot(x, p["wq"]) + p["bq"]) / (dk ** 0.5)
    k = (_ref_dot(x, p["wk"]) + p["bk"]).astype(jnp.bfloat16)
    v = (_ref_dot(x, p["wv"]) + p["bv"]).astype(jnp.bfloat16)
    s = jnp.einsum("bnd,bmd->bnm", q.astype(jnp.bfloat16), k,
                   preferred_element_type=jnp.float32)
    s = jax.nn.softmax(s, axis=-1)
    attn = jnp.einsum("bnm,bmd->bnd", s.astype(jnp.bfloat16), v,
                      preferred_element_type=jnp.float32)
    unified = _ref_dot(attn, p["wu"]) + p["bu"]

    def ln(h, g, b, eps=1e-5):
        mu = jnp.mean(h, axis=-1, keepdims=True)
        var = jnp.mean((h - mu) ** 2, axis=-1, keepdims=True)
        return (h - mu) / jnp.sqrt(var + eps) * g + b

    n1 = ln(x + unified, p["g1"], p["be1"])
    f = jnp.maximum(_ref_dot(n1, p["w1"]) + p["bf1"], 0.0)
    f = _ref_dot(f, p["w2"]) + p["bf2"]
    y = ln(n1 + f, p["g2"], p["be2"])
    return y, k.astype(jnp.float32), v.astype(jnp.float32)


if __name__ == "__main__":
    # Small shapes consistent with the module: x is (d, n, dmodel).
    d, n = 2, 8
    dmodel, dq, dk, dv = 32, 8, 8, 8
    heads, feedforward = 4, 64
    num_encoders = 2

    root = jax.random.PRNGKey(0)
    kx, kp = jax.random.split(root)
    x = jax.random.normal(kx, (d, n, dmodel), jnp.float32)
    params_list = init_params(kp, dmodel, dq, dk, dv, heads, feedforward,
                              num_encoders)

    y, keys, vals = transformer_encoder(x, params_list, dk=dk,
                                        return_keys_and_values=True)
    y = jax.block_until_ready(y)

    # Reference: faithful to the PyTorch forward (each layer reads the original
    # x; only the last layer's outputs survive).
    y_ref = k_ref = v_ref = None
    for p in params_list:
        y_ref, k_ref, v_ref = reference_layer(x, p, dk)

    assert jnp.allclose(y, y_ref, atol=2e-2, rtol=2e-2), \
        float(jnp.max(jnp.abs(y - y_ref)))
    assert jnp.allclose(keys, k_ref, atol=1e-2, rtol=1e-2), \
        float(jnp.max(jnp.abs(keys - k_ref)))
    assert jnp.allclose(vals, v_ref, atol=1e-2, rtol=1e-2), \
        float(jnp.max(jnp.abs(vals - v_ref)))

    print("KERNEL_OK")
</pallas_src>

<mosaic_0001>
module attributes {stable_mosaic.version = 11 : i64} {
  func.func @_kv_projection_kernel(%arg0: i32, %arg1: i32, %arg2: memref<1x128x128xf32, #tpu.memory_space<vmem>>, %arg3: memref<128x256xbf16, #tpu.memory_space<vmem>>, %arg4: memref<1x256xf32, #tpu.memory_space<vmem>>, %arg5: memref<1x128x128xbf16, #tpu.memory_space<vmem>>, %arg6: memref<1x128x128xbf16, #tpu.memory_space<vmem>>) attributes {dimension_semantics = [#tpu.dimension_semantics<parallel>, #tpu.dimension_semantics<parallel>], iteration_bounds = array<i64: 2, 1>, scalar_prefetch = 0 : i64, scratch_operands = 0 : i64, tpu.core_type = #tpu.core_type<tc>, window_params = [{transform_indices = @transform_0, window_bounds = array<i64: 1, 128, 128>}, {pipeline_mode = #tpu.pipeline_mode<synchronous>, transform_indices = @transform_1, window_bounds = array<i64: 128, 256>}, {pipeline_mode = #tpu.pipeline_mode<synchronous>, transform_indices = @transform_2, window_bounds = array<i64: 1, 256>}, {transform_indices = @transform_3, window_bounds = array<i64: 1, 128, 128>}, {transform_indices = @transform_4, window_bounds = array<i64: 1, 128, 128>}]} {
    %c0 = arith.constant 0 : index
    %c0_0 = arith.constant 0 : index
    %c0_1 = arith.constant 0 : index
    %0 = vector.load %arg2[%c0, %c0_0, %c0_1] : memref<1x128x128xf32, #tpu.memory_space<vmem>>, vector<1x128x128xf32>
    %1 = vector.shape_cast %0 : vector<1x128x128xf32> to vector<128x128xf32>
    %2 = arith.truncf %1 : vector<128x128xf32> to vector<128x128xbf16>
    %c0_2 = arith.constant 0 : index
    %c0_3 = arith.constant 0 : index
    %3 = vector.load %arg3[%c0_2, %c0_3] : memref<128x256xbf16, #tpu.memory_space<vmem>>, vector<128x256xbf16>
    %cst = arith.constant dense<0.000000e+00> : vector<128x256xf32>
    %4 = tpu.matmul %2, %3, %cst {dimension_numbers = #tpu.dot_dimension_numbers<[1], [0], [0], [1], [0, 0, 1, 1], [], []>} : vector<128x128xbf16>, vector<128x256xbf16>, vector<128x256xf32> -> vector<128x256xf32>
    %c0_4 = arith.constant 0 : index
    %c0_5 = arith.constant 0 : index
    %5 = vector.load %arg4[%c0_4, %c0_5] : memref<1x256xf32, #tpu.memory_space<vmem>>, vector<1x256xf32>
    %6 = vector.broadcast %5 : vector<1x256xf32> to vector<128x256xf32>
    %7 = arith.addf %4, %6 : vector<128x256xf32>
    %8 = vector.extract_strided_slice %7 {offsets = [0, 0], sizes = [128, 128], strides = [1, 1]} : vector<128x256xf32> to vector<128x128xf32>
    %9 = arith.truncf %8 : vector<128x128xf32> to vector<128x128xbf16>
    %c0_6 = arith.constant 0 : index
    %c0_7 = arith.constant 0 : index
    %c0_8 = arith.constant 0 : index
    %10 = vector.load %arg5[%c0_6, %c0_7, %c0_8] : memref<1x128x128xbf16, #tpu.memory_space<vmem>>, vector<1x128x128xbf16>
    %11 = vector.shape_cast %10 : vector<1x128x128xbf16> to vector<128x128xbf16>
    %12 = vector.shape_cast %9 : vector<128x128xbf16> to vector<1x128x128xbf16>
    tpu.vector_store %arg5[%c0_6, %c0_7, %c0_8], %12 {strides = array<i32>} : memref<1x128x128xbf16, #tpu.memory_space<vmem>>, vector<1x128x128xbf16>,
    %13 = vector.extract_strided_slice %7 {offsets = [0, 128], sizes = [128, 128], strides = [1, 1]} : vector<128x256xf32> to vector<128x128xf32>
    %14 = arith.truncf %13 : vector<128x128xf32> to vector<128x128xbf16>
    %c0_9 = arith.constant 0 : index
    %c0_10 = arith.constant 0 : index
    %c0_11 = arith.constant 0 : index
    %15 = vector.load %arg6[%c0_9, %c0_10, %c0_11] : memref<1x128x128xbf16, #tpu.memory_space<vmem>>, vector<1x128x128xbf16>
    %16 = vector.shape_cast %15 : vector<1x128x128xbf16> to vector<128x128xbf16>
    %17 = vector.shape_cast %14 : vector<128x128xbf16> to vector<1x128x128xbf16>
    tpu.vector_store %arg6[%c0_9, %c0_10, %c0_11], %17 {strides = array<i32>} : memref<1x128x128xbf16, #tpu.memory_space<vmem>>, vector<1x128x128xbf16>,
    return
  }
  func.func @transform_0(%arg0: i32, %arg1: i32) -> (i32, i32, i32) {
    %c0_i32 = arith.constant 0 : i32
    %c0_i32_0 = arith.constant 0 : i32
    return %arg0, %arg1, %c0_i32 : i32, i32, i32
  }
  func.func @transform_1(%arg0: i32, %arg1: i32) -> (i32, i32) {
    %c0_i32 = arith.constant 0 : i32
    %c0_i32_0 = arith.constant 0 : i32
    %c0_i32_1 = arith.constant 0 : i32
    return %c0_i32, %c0_i32_0 : i32, i32
  }
  func.func @transform_2(%arg0: i32, %arg1: i32) -> (i32, i32) {
    %c0_i32 = arith.constant 0 : i32
    %c0_i32_0 = arith.constant 0 : i32
    %c0_i32_1 = arith.constant 0 : i32
    return %c0_i32, %c0_i32_0 : i32, i32
  }
  func.func @transform_3(%arg0: i32, %arg1: i32) -> (i32, i32, i32) {
    %c0_i32 = arith.constant 0 : i32
    %c0_i32_0 = arith.constant 0 : i32
    return %arg0, %arg1, %c0_i32 : i32, i32, i32
  }
  func.func @transform_4(%arg0: i32, %arg1: i32) -> (i32, i32, i32) {
    %c0_i32 = arith.constant 0 : i32
    %c0_i32_0 = arith.constant 0 : i32
    return %arg0, %arg1, %c0_i32 : i32, i32, i32
  }
}

</mosaic_0001>

<bundles_post_ra>
// kernel: tpu_custom_call.1
= control target key start
LH: loop header
LB: loop body
LE: loop exit
PB: predicated region body
PF: predicated region fallthrough
CT: control target
= control target key end

     0   :  { %s1676_s0 = inlined_call_operand.hbm [shape: f32[2,128,128], index: 0, kind: input, shape index: {}]   ;;  %s1677_s1 = inlined_call_operand.hbm [shape: bf16[128,256], index: 1, kind: input, shape index: {}]   ;;  %s1678_s2 = inlined_call_operand.vmem [shape: f32[1,256], index: 2, kind: input, shape index: {}]   ;;  %s1679_s3 = inlined_call_operand.hbm [shape: bf16[2,128,128], index: 3, kind: output, shape index: {0}]   ;;  %s1680_s4 = inlined_call_operand.hbm [shape: bf16[2,128,128], index: 4, kind: output, shape index: {1}]  }
   0x1   :  { %1684 = sst [smem:[#allocation14_spill]] %s1677_s1 }
   0x2   :  { %10 = vsyncpa [#allocation3], 0 }
   0x3   :  { %12 = vsyncpa [#allocation3 + $0x1], 0 }
   0x4   :  { %13 = vsyncpa [#allocation6], 0 }
   0x5   :  { %14 = vsyncpa [#allocation4], 0 }
   0x6   :  { %16 = vsyncpa [#allocation4 + $0x1], 0 }
   0x7   :  { %17 = vsyncpa [#allocation9], 0 }
   0x8   :  { %19 = vsyncpa [#allocation9 + $0x1], 0  ;;  %s1367_s15 = smov 0   ;;  %s1369_s16 = smov 0  }
   0x9   :  { %s1371_s17 = smov 0   ;;  %s1373_s18 = smov 0  }
   0xa   :  { %s1375_s19 = smov 0   ;;  %s1377_s20 = smov 0  }
   0xb LB: > { %s842_s21 = sadd.s32 4294967295, %s1331_s20   ;;  %s843_s22 = sadd.s32 4294967294, %s1331_s20   ;;  %s1331_s20 = sphi %s1377_s20, %s25_s20   ;;  %s1327_s19 = sphi %s1375_s19, %s1704_s19   ;;  %s1323_s18 = sphi %s1373_s18, %s1703_s18   ;;  %s1319_s17 = sphi %s1371_s17, %s1702_s17   ;;  %s1315_s16 = sphi %s1369_s16, %s1701_s16   ;;  %s1311_s15 = sphi %s1367_s15, %s1700_s15  }
   0xc   : > { %p59_p0 = scmp.ne.s32.totalorder %s1315_s16, %s1311_s15  ;;  %p1401_p1 = scmp.eq.s32.totalorder %s842_s21, 0 }
   0xd   : > { %p1405_p2 = scmp.eq.s32.totalorder %s842_s21, 1  ;;  %p133_p3 = scmp.eq.s32.totalorder %s843_s22, 1 }
   0xe   : > { %p1411_p4 = por %p1401_p1, %p59_p0  ;;  %p844_p5 = scmp.ge.s32.totalorder %s1331_s20, 1 }
   0xf   : > { %p1416_p6 = por %p133_p3, %p59_p0  ;;  %p168_p7 = scmp.lt.s32.totalorder %s1331_s20, 3 }
  0x10   : > { %s1687_s25 = scalar_select %p1411_p4, 1, 0 }
  0x11   : > { %s1688_s26 = scalar_select %p1416_p6, 1, 0 }
  0x12   : > { %p1421_p8 = pnand %p844_p5, %p168_p7  ;;  %s1333_s28 = smov [#allocation5]  }
  0x13   : > { %s180_s29 = sshll.u32 %s1333_s28, 4  ;;  %s37_s5 = sadd.s32 1, %s1327_s19  ;;  %s181_s29 = int_to_ptr.vmem [resolvable:$true] %s180_s29 }
  0x14   : > { %p1066_p9 = pneg %p1421_p8  ;;  %s1174_s6 = scalar_lea.vmem %s181_s29, 2048 }
  0x15   : > { %p1175_p13 = scmp.ne.s32.totalorder %s181_s29, %s1174_s6  ;;  %p1182_p5 = scmp.lt.s32.totalorder %s181_s29, %s181_s29 }
  0x16   : > { %p1430_p11 = pnand %p1066_p9, %p1401_p1  ;;  %p1183_p7 = scmp.lt.s32.totalorder %s1174_s6, %s1174_s6 }
  0x18   : > { %p1165_p12 = pneg %p1430_p11  ;;  %p1184_p6 = por %p1183_p7, %p1182_p5 }
  0x1a   : > { %p1177_p0 = pnand %p1175_p13, %p1165_p12 }
  0x1c   : > { %p1178_p3 = pneg %p1177_p0 }
  0x1e   : > { %p1185_p4 = pnand %p1184_p6, %p1178_p3 }
  0x20   : > { %1188 = shalt.err (!%p1185_p4)
}
  0x21   : > { %s1682_s7 = smov 128   ;;  %s1683_s8 = smov 8  }
  0x22   : > { %s1691_s1 = sld [smem:[#allocation14_spill]]  ;;  %p39_p4 = scmp.ge.s32.totalorder %s37_s5, 2 }
  0x23   : > { %s46_s11 = sadd.s32 1, %s1319_s17  ;;  %p53_p6 = scmp.ne.s32.totalorder %s1319_s17, %s1315_s16 }
  0x24   : > { %p54_p9 = scmp.eq.s32.totalorder %s1331_s20, 0  ;;  %s1706_s5 = smov (%p39_p4, %s37_s5), 0 }
  0x25   : > { %p1457_p13 = por %p1405_p2, %p53_p6  ;;  %s41_s14 = ssub.s32 %s1327_s19, %s1706_s5 }
  0x26   : > { %p1451_p12 = por %p54_p9, %p53_p6  ;;  %p1082_p0 = scmp.lt.s32.totalorder %s1331_s20, 2 }
  0x27   : > { %s197_s21 = sand.u32 1, %s1319_s17  }
  0x28   : > { %1069 = dma.hbm_to_vmem [thread:$0]  (!%p1430_p11), %s1691_s1, 2048, %s181_s29, [#allocation6], %s1682_s7, %s1682_s7, %s1683_s8  }
  0x29   : > { %p44_p11 = scmp.eq.s32.totalorder %s41_s14, 0  ;;  %s847_s22 = sshll.u32 %s197_s21, 7 }
  0x2a   : > { %s911_s29 = sshll.u32 %s1327_s19, 11  ;;  %s201_s10 = scalar_lea.vmem [#allocation2], %s847_s22 }
  0x2b   : > { %s1466_s28 = scalar_select %p44_p11, %s1319_s17, %s46_s11  }
  0x2c   : > { %s209_s9 = scalar_lea.hbm %s1676_s0, %s911_s29  ;;  %s210_s7 = sshll.u32 %s201_s10, 4  ;;  %s211_s7 = int_to_ptr.vmem [resolvable:$true] %s210_s7 }
  0x2d   : > { %p1474_p2 = pnand %p1082_p0, %p1451_p12  ;;  %s198_s8 = scalar_lea.sflag [#allocation3], %s197_s21 }
  0x2e   : > { %s1202_s14 = scalar_lea.vmem %s211_s7, 2048  ;;  %s1336_s11 = smov [#allocation2]  }
  0x2f   : > { %p1191_p3 = pneg %p1474_p2  ;;  %p1203_p5 = scmp.ne.s32.totalorder %s211_s7, %s1202_s14 }
  0x30   : > { %s1207_s1 = sshll.u32 %s1336_s11, 4  ;;  %s1208_s1 = int_to_ptr.vmem [resolvable:$false] %s1207_s1 }
  0x31   : > { %p1205_p7 = pnand %p1203_p5, %p1191_p3  ;;  %s1209_s29 = scalar_lea.vmem %s1208_s1, 4096 }
  0x32   : > { %p1210_p6 = scmp.lt.s32.totalorder %s211_s7, %s1208_s1  ;;  %p1211_p9 = scmp.lt.s32.totalorder %s1209_s29, %s1202_s14 }
  0x33   : > { %p1206_p4 = pneg %p1205_p7 }
  0x34   : > { %p1212_p11 = por %p1211_p9, %p1210_p6 }
  0x36   : > { %p1213_p10 = pnand %p1212_p11, %p1206_p4 }
  0x38   : > { %1216 = shalt.err (!%p1213_p10)
}
  0x39   : > { %s1695_s12 = smov 8   ;;  %s1696_s22 = smov 128  }
  0x3a   : > { %1073 = dma.hbm_to_vmem [thread:$0]  (!%p1474_p2), %s209_s9, 2048, %s211_s7, %s198_s8, %s1696_s22, %s1696_s22, %s1695_s12  }
  0x3b   : > { %222 = sbr.rel (%p1421_p8) target bundleno = 362 (0x16a), region = 32  ;;  %s1488_s21 = sand.u32 (!%p1421_p8), 1, %s1315_s16  }
  0x3c   : > { %s851_s1 = sshll.u32 (!%p1421_p8), %s1488_s21, 7  ;;  %s225_s30 = scalar_lea.sflag (!%p1421_p8), [#allocation3], %s1488_s21 }
  0x3d   : > { %s1492_s6 = scalar_lea.vmem (!%p1421_p8), [#allocation2], %s851_s1  ;;  %p1697_p10 = scmp.ne.s32.totalorder (!%p1421_p8), %s1687_s25, 0 }
  0x40   : > { %1294 = dma.done.wait (%p1697_p10), %s225_s30, 2048  }
  0x41   : > { %1296 = vsyncadd (%p1697_p10), %s225_s30, 4294965248 }
  0x42   : > { %1298 = dma.done.wait (%p1401_p1), [#allocation6], 2048  }
  0x43   : > { %1300 = vsyncadd (%p1401_p1), [#allocation6], 4294965248  ;;  %v1337_v0 = vmov 0   ;;  %v1139_v1 = vld [vmem:[#allocation5 + $0x74] ss:$8 sps:$4 sm:$0xff]   ;;  %v266_v17 = vld [vmem:[%s1492_s6] sm:$0xff]  ;;  %v308_v41 = vlaneseq }
  0x44   : > { %430 = vmatprep.mubr.bf16.mxu0 %v1337_v0  ;;  %470 = vmatprep.mubr.bf16.mxu1 %v1337_v0  ;;  %v1141_v2 = vld [vmem:[#allocation5 + $0x70] ss:$8 sps:$4 sm:$0xff]   ;;  %v1142_v3 = vld [vmem:[#allocation5 + $0x64] ss:$8 sps:$4 sm:$0xff]   ;;  %v1144_v4 = vld [vmem:[#allocation5 + $0x60] ss:$8 sps:$4 sm:$0xff]  }
  0x45   : > { %398 = vmatprep.subr.bf16.mxu0 %v1139_v1  ;;  %1040 = vmatprep.subr.bf16.mxu1 %v1139_v1  ;;  %v1145_v5 = vld [vmem:[#allocation5 + $0x54] ss:$8 sps:$4 sm:$0xff]   ;;  %v1147_v6 = vld [vmem:[#allocation5 + $0x50] ss:$8 sps:$4 sm:$0xff]   ;;  %v1148_v7 = vld [vmem:[#allocation5 + $0x44] ss:$8 sps:$4 sm:$0xff]  }
  0x46   : > { %399 = vmatpush1.bf16.msra.mxu0 %v1141_v2  ;;  %1048 = vmatpush1.bf16.msra.mxu1 %v1141_v2  ;;  %v1150_v8 = vld [vmem:[#allocation5 + $0x40] ss:$8 sps:$4 sm:$0xff]   ;;  %v1151_v9 = vld [vmem:[#allocation5 + $0x34] ss:$8 sps:$4 sm:$0xff]   ;;  %v1153_v10 = vld [vmem:[#allocation5 + $0x30] ss:$8 sps:$4 sm:$0xff]  }
  0x47   : > { %400 = vmatprep.subr.bf16.mxu0 %v1142_v3  ;;  %1041 = vmatprep.subr.bf16.mxu1 %v1142_v3  ;;  %v1154_v11 = vld [vmem:[#allocation5 + $0x24] ss:$8 sps:$4 sm:$0xff]   ;;  %v1156_v12 = vld [vmem:[#allocation5 + $0x20] ss:$8 sps:$4 sm:$0xff]   ;;  %v1157_v13 = vld [vmem:[#allocation5 + $0x14] ss:$8 sps:$4 sm:$0xff]  }
  0x48   : > { %v1159_v14 = vld [vmem:[#allocation5 + $0x10] ss:$8 sps:$4 sm:$0xff]   ;;  %v1160_v15 = vld [vmem:[#allocation5 + $0x4] ss:$8 sps:$4 sm:$0xff]   ;;  %v1162_v16 = vld [vmem:[#allocation5] ss:$8 sps:$4 sm:$0xff]  }
  0x49   : > { %v267_v18 = vld [vmem:[%s1492_s6 + $0x8] sm:$0xff]  ;;  %v274_v19 = vld [vmem:[%s1492_s6 + $0x40] sm:$0xff]  ;;  %v268_v23 = vld [vmem:[%s1492_s6 + $0x10] sm:$0xff]  ;;  %v309_v42 = vshrl.u32 %v308_v41, 7  ;;  %s853_s27 = sshll.u32 %s1488_s21, 6  ;;  %s944_s10 = sshll.u32 %s1323_s18, 10 }
  0x4a   : > { %401 = vmatpush1.bf16.msra.mxu0 %v1144_v4  ;;  %1049 = vmatpush1.bf16.msra.mxu1 %v1144_v4  ;;  %v275_v20 = vld [vmem:[%s1492_s6 + $0x48] sm:$0xff]  ;;  %v282_v21 = vpack.c.bf16 %v267_v18, %v266_v17  ;;  %v269_v24 = vld [vmem:[%s1492_s6 + $0x18] sm:$0xff]  ;;  %v276_v25 = vld [vmem:[%s1492_s6 + $0x50] sm:$0xff]  ;;  %s1542_s7 = scalar_lea.vmem [#allocation7], %s853_s27  ;;  %s1546_s8 = scalar_lea.vmem [#allocation8], %s853_s27 }
  0x4b   : > { %402 = vmatprep.subr.bf16.mxu0 %v1145_v5  ;;  %1042 = vmatprep.subr.bf16.mxu1 %v1145_v5  ;;  %v286_v22 = vpack.c.bf16 %v275_v20, %v274_v19  ;;  %v277_v26 = vld [vmem:[%s1492_s6 + $0x58] sm:$0xff]  ;;  %v283_v27 = vpack.c.bf16 %v269_v24, %v268_v23  ;;  %v270_v29 = vld [vmem:[%s1492_s6 + $0x20] sm:$0xff]  ;;  %v271_v30 = vld [vmem:[%s1492_s6 + $0x28] sm:$0xff]  ;;  %v310_v43 = vsub.s32 0, %v309_v42  ;;  %v314_v45 = vsub.s32 1, %v309_v42  ;;  %s692_s9 = sshll.u32 %s1542_s7, 4  ;;  %s1588_s11 = scalar_lea.hbm %s1679_s3, %s944_s10  ;;  %s1576_s9 = int_to_ptr.vmem [resolvable:$true] %s692_s9 }
  0x4c   : > { %v287_v28 = vpack.c.bf16 %v277_v26, %v276_v25  ;;  %v278_v31 = vld [vmem:[%s1492_s6 + $0x60] sm:$0xff]  ;;  %v279_v32 = vld [vmem:[%s1492_s6 + $0x68] sm:$0xff]  ;;  %v284_v33 = vpack.c.bf16 %v271_v30, %v270_v29  ;;  %v272_v35 = vld [vmem:[%s1492_s6 + $0x30] sm:$0xff]  ;;  %s710_s24 = sshll.u32 %s1546_s8, 4  ;;  %s1599_s22 = scalar_lea.hbm %s1680_s4, %s944_s10  ;;  %s1592_s24 = int_to_ptr.vmem [resolvable:$true] %s710_s24 }
  0x4d   : > { %v288_v34 = vpack.c.bf16 %v279_v32, %v278_v31  ;;  %v273_v36 = vld [vmem:[%s1492_s6 + $0x38] sm:$0xff]  ;;  %v280_v37 = vld [vmem:[%s1492_s6 + $0x70] sm:$0xff]  ;;  %v306_v44 = vld [vmem:[%s1678_s2] sm:$0x3]  ;;  %s672_s1 = scalar_lea.sflag [#allocation4], %s1488_s21  ;;  %s1217_s30 = scalar_lea.vmem %s1576_s9, 1024 }
  0x4e   : > { %403 = vmatpush1.bf16.msra.mxu0 %v1147_v6  ;;  %1050 = vmatpush1.bf16.msra.mxu1 %v1147_v6  ;;  %v281_v38 = vld [vmem:[%s1492_s6 + $0x78] sm:$0xff]  ;;  %v285_v39 = vpack.c.bf16 %v273_v36, %v272_v35  ;;  %v1529_v48 = vrot.slane %v306_v44, %v310_v43  ;;  %v1531_v49 = vrot.slane %v306_v44, %v314_v45  ;;  %p1218_p1 = scmp.ne.s32.totalorder %s1576_s9, %s1217_s30  ;;  %s1338_s6 = smov [#allocation7]  }
  0x4f   : > { %404 = vmatprep.subr.bf16.mxu0 %v1148_v7  ;;  %1043 = vmatprep.subr.bf16.mxu1 %v1148_v7  ;;  %v289_v40 = vpack.c.bf16 %v281_v38, %v280_v37  ;;  %s1221_s23 = sshll.u32 %s1338_s6, 4  ;;  %s1222_s23 = int_to_ptr.vmem [resolvable:$false] %s1221_s23 }
  0x50   : > { %p1219_p8 = pnand %p1218_p1, %p1457_p13  ;;  %s1223_s25 = scalar_lea.vmem %s1222_s23, 2048 }
  0x51   : > { %p1224_p0 = scmp.lt.s32.totalorder %s1576_s9, %s1222_s23  ;;  %p1225_p2 = scmp.lt.s32.totalorder %s1223_s25, %s1217_s30 }
  0x52   : > { %405 = vmatpush1.bf16.msra.mxu0 %v1150_v8  ;;  %1051 = vmatpush1.bf16.msra.mxu1 %v1150_v8  ;;  %p1220_p12 = pneg %p1219_p8 }
  0x53   : > { %406 = vmatprep.subr.bf16.mxu0 %v1151_v9  ;;  %1044 = vmatprep.subr.bf16.mxu1 %v1151_v9  ;;  %p1226_p3 = por %p1225_p2, %p1224_p0 }
  0x55   : > { %p1227_p5 = pnand %p1226_p3, %p1220_p12 }
  0x56   : > { %407 = vmatpush1.bf16.msra.mxu0 %v1153_v10  ;;  %1052 = vmatpush1.bf16.msra.mxu1 %v1153_v10 }
  0x57   : > { %408 = vmatprep.subr.bf16.mxu0 %v1154_v11  ;;  %1045 = vmatprep.subr.bf16.mxu1 %v1154_v11 }
  0x5a   : > { %409 = vmatpush1.bf16.msra.mxu0 %v1156_v12  ;;  %1053 = vmatpush1.bf16.msra.mxu1 %v1156_v12 }
  0x5b   : > { %410 = vmatprep.subr.bf16.mxu0 %v1157_v13  ;;  %1046 = vmatprep.subr.bf16.mxu1 %v1157_v13 }
  0x5e   : > { %411 = vmatpush1.bf16.msra.mxu0 %v1159_v14  ;;  %1054 = vmatpush1.bf16.msra.mxu1 %v1159_v14 }
  0x5f   : > { %412 = vmatprep.subr.bf16.mxu0 %v1160_v15  ;;  %1047 = vmatprep.subr.bf16.mxu1 %v1160_v15 }
  0x62   : > { %413 = vmatpush1.bf16.msra.mxu0 %v1162_v16  ;;  %1055 = vmatpush1.bf16.msra.mxu1 %v1162_v16 }
  0x65   : > { %431 = vmatmul.mubr.bf16.vlgmr.msra.gmra.mxu0 %v282_v21  ;;  %471 = vmatmul.mubr.bf16.vlgmr.msra.gmra.mxu1 %v286_v22 }
  0x66   : > { %440 = vmatprep.mubr.bf16.mxu0 %v1337_v0  ;;  %480 = vmatprep.mubr.bf16.mxu1 %v1337_v0 }
  0x6d   : > { %441 = vmatmul.mubr.bf16.gmra.mxu0 %v283_v27  ;;  %481 = vmatmul.mubr.bf16.gmra.mxu1 %v287_v28 }
  0x6e   : > { %450 = vmatprep.mubr.bf16.mxu0 %v1337_v0  ;;  %490 = vmatprep.mubr.bf16.mxu1 %v1337_v0 }
  0x75   : > { %451 = vmatmul.mubr.bf16.gmra.mxu0 %v284_v33  ;;  %491 = vmatmul.mubr.bf16.gmra.mxu1 %v288_v34 }
  0x76   : > { %460 = vmatprep.mubr.bf16.mxu0 %v1337_v0  ;;  %500 = vmatprep.mubr.bf16.mxu1 %v1337_v0 }
  0x7d   : > { %461 = vmatmul.mubr.bf16.gmra.mxu0 %v285_v39  ;;  %501 = vmatmul.mubr.bf16.gmra.mxu1 %v289_v40 }
 0x125   : > { %v432_v46 = vpop.f32.mrf.mxu0  ;;  %v472_v47 = vpop.f32.mrf.mxu1 }
 0x126   : > { %v433_v54 = vadd.f32 %v432_v46, %v1529_v48  ;;  %v473_v55 = vadd.f32 %v472_v47, %v1529_v48 }
 0x127   : > { %v434_v50 = vpop.f32.mrf.mxu0  ;;  %v474_v51 = vpop.f32.mrf.mxu1 }
 0x128   : > { %v435_v58 = vadd.f32 %v434_v50, %v1531_v49  ;;  %v475_v59 = vadd.f32 %v474_v51, %v1531_v49 }
 0x129   : > { %v436_v52 = vpop.f32.mrf.mxu0  ;;  %v476_v53 = vpop.f32.mrf.mxu1 }
 0x12a   : > { %v437_v56 = vadd.f32 %v436_v52, %v1529_v48  ;;  %v477_v57 = vadd.f32 %v476_v53, %v1529_v48 }
 0x12b   : > { %v438_v60 = vpop.f32.mrf.mxu0  ;;  %v478_v61 = vpop.f32.mrf.mxu1 }
 0x12c   : > { %v949_v62 = vpack.c.bf16 %v437_v56, %v433_v54  ;;  %v969_v63 = vpack.c.bf16 %v477_v57, %v473_v55  ;;  %v439_v0 = vadd.f32 %v438_v60, %v1531_v49  ;;  %v479_v1 = vadd.f32 %v478_v61, %v1531_v49 }
 0x12d   : > { %v442_v2 = vpop.f32.mrf.mxu0  ;;  %v482_v3 = vpop.f32.mrf.mxu1 }
 0x12e   : > { %950 = vst [vmem:[%s1542_s7] sm:$0xff] %v949_v62   ;;  %1029 = vst [vmem:[%s1542_s7 + $0x20] sm:$0xff] %v969_v63   ;;  %v989_v4 = vpack.c.bf16 %v439_v0, %v435_v58  ;;  %v1009_v5 = vpack.c.bf16 %v479_v1, %v475_v59  ;;  %v443_v10 = vadd.f32 %v442_v2, %v1529_v48 }
 0x12f   : > { %v444_v6 = vpop.f32.mrf.mxu0  ;;  %v484_v7 = vpop.f32.mrf.mxu1  ;;  %v483_v11 = vadd.f32 %v482_v3, %v1529_v48 }
 0x130   : > { %990 = vst [vmem:[%s1546_s8] sm:$0xff] %v989_v4   ;;  %1036 = vst [vmem:[%s1546_s8 + $0x20] sm:$0xff] %v1009_v5   ;;  %v445_v14 = vadd.f32 %v444_v6, %v1531_v49  ;;  %v485_v15 = vadd.f32 %v484_v7, %v1531_v49 }
 0x131   : > { %v446_v8 = vpop.f32.mrf.mxu0  ;;  %v486_v9 = vpop.f32.mrf.mxu1 }
 0x132   : > { %v447_v12 = vadd.f32 %v446_v8, %v1529_v48  ;;  %v487_v13 = vadd.f32 %v486_v9, %v1529_v48 }
 0x133   : > { %v448_v16 = vpop.f32.mrf.mxu0  ;;  %v488_v17 = vpop.f32.mrf.mxu1 }
 0x134   : > { %v954_v18 = vpack.c.bf16 %v447_v12, %v443_v10  ;;  %v974_v19 = vpack.c.bf16 %v487_v13, %v483_v11  ;;  %v449_v20 = vadd.f32 %v448_v16, %v1531_v49  ;;  %v489_v21 = vadd.f32 %v488_v17, %v1531_v49 }
 0x135   : > { %v452_v22 = vpop.f32.mrf.mxu0  ;;  %v492_v23 = vpop.f32.mrf.mxu1 }
 0x136   : > { %1026 = vst [vmem:[%s1542_s7 + $0x8] sm:$0xff] %v954_v18   ;;  %1030 = vst [vmem:[%s1542_s7 + $0x28] sm:$0xff] %v974_v19   ;;  %v994_v24 = vpack.c.bf16 %v449_v20, %v445_v14  ;;  %v1014_v25 = vpack.c.bf16 %v489_v21, %v485_v15  ;;  %v453_v30 = vadd.f32 %v452_v22, %v1529_v48 }
 0x137   : > { %v454_v26 = vpop.f32.mrf.mxu0  ;;  %v494_v27 = vpop.f32.mrf.mxu1  ;;  %v493_v31 = vadd.f32 %v492_v23, %v1529_v48 }
 0x138   : > { %1033 = vst [vmem:[%s1546_s8 + $0x8] sm:$0xff] %v994_v24   ;;  %1037 = vst [vmem:[%s1546_s8 + $0x28] sm:$0xff] %v1014_v25   ;;  %v455_v34 = vadd.f32 %v454_v26, %v1531_v49  ;;  %v495_v35 = vadd.f32 %v494_v27, %v1531_v49 }
 0x139   : > { %v456_v28 = vpop.f32.mrf.mxu0  ;;  %v496_v29 = vpop.f32.mrf.mxu1 }
 0x13a   : > { %v457_v32 = vadd.f32 %v456_v28, %v1529_v48  ;;  %v497_v33 = vadd.f32 %v496_v29, %v1529_v48 }
 0x13b   : > { %v458_v36 = vpop.f32.mrf.mxu0  ;;  %v498_v37 = vpop.f32.mrf.mxu1 }
 0x13c   : > { %v959_v38 = vpack.c.bf16 %v457_v32, %v453_v30  ;;  %v979_v39 = vpack.c.bf16 %v497_v33, %v493_v31  ;;  %v459_v40 = vadd.f32 %v458_v36, %v1531_v49  ;;  %v499_v41 = vadd.f32 %v498_v37, %v1531_v49 }
 0x13d   : > { %v462_v42 = vpop.f32.mrf.mxu0  ;;  %v502_v43 = vpop.f32.mrf.mxu1 }
 0x13e   : > { %1027 = vst [vmem:[%s1542_s7 + $0x10] sm:$0xff] %v959_v38   ;;  %1031 = vst [vmem:[%s1542_s7 + $0x30] sm:$0xff] %v979_v39   ;;  %v999_v44 = vpack.c.bf16 %v459_v40, %v455_v34  ;;  %v1019_v45 = vpack.c.bf16 %v499_v41, %v495_v35  ;;  %v463_v52 = vadd.f32 %v462_v42, %v1529_v48 }
 0x13f   : > { %v464_v46 = vpop.f32.mrf.mxu0  ;;  %v504_v47 = vpop.f32.mrf.mxu1  ;;  %v503_v53 = vadd.f32 %v502_v43, %v1529_v48 }
 0x140   : > { %1034 = vst [vmem:[%s1546_s8 + $0x10] sm:$0xff] %v999_v44   ;;  %1038 = vst [vmem:[%s1546_s8 + $0x30] sm:$0xff] %v1019_v45   ;;  %v465_v56 = vadd.f32 %v464_v46, %v1531_v49  ;;  %v505_v57 = vadd.f32 %v504_v47, %v1531_v49 }
 0x141   : > { %v466_v50 = vpop.f32.mrf.mxu0  ;;  %v506_v51 = vpop.f32.mrf.mxu1 }
 0x142   : > { %v467_v54 = vadd.f32 %v466_v50, %v1529_v48  ;;  %v507_v55 = vadd.f32 %v506_v51, %v1529_v48 }
 0x143   : > { %v468_v58 = vpop.f32.mrf.mxu0  ;;  %v508_v59 = vpop.f32.mrf.mxu1 }
 0x144   : > { %v964_v60 = vpack.c.bf16 %v467_v54, %v463_v52  ;;  %v984_v61 = vpack.c.bf16 %v507_v55, %v503_v53  ;;  %v469_v62 = vadd.f32 %v468_v58, %v1531_v49  ;;  %v509_v48 = vadd.f32 %v508_v59, %v1531_v49 }
 0x146   : > { %1028 = vst [vmem:[%s1542_s7 + $0x18] sm:$0xff] %v964_v60   ;;  %1032 = vst [vmem:[%s1542_s7 + $0x38] sm:$0xff] %v984_v61   ;;  %v1004_v63 = vpack.c.bf16 %v469_v62, %v465_v56  ;;  %v1024_v0 = vpack.c.bf16 %v509_v48, %v505_v57 }
 0x147   : > { %1230 = shalt.err (!%p1227_p5)
}
 0x148   : > { %s1231_s27 = scalar_lea.hbm %s1588_s11, 1024  ;;  %s1235_s18 = scalar_lea.hbm %s1679_s3, 2048 }
 0x149   : > { %p1232_p7 = scmp.ne.s32.totalorder %s1588_s11, %s1231_s27  ;;  %p1236_p9 = scmp.lt.s32.totalorder %s1588_s11, %s1679_s3 }
 0x14a   : > { %p1237_p11 = scmp.lt.s32.totalorder %s1235_s18, %s1231_s27 }
 0x14b   : > { %p1233_p4 = pnand %p1232_p7, %p1457_p13 }
 0x14c   : > { %p1238_p10 = por %p1237_p11, %p1236_p9 }
 0x14d   : > { %p1234_p6 = pneg %p1233_p4 }
 0x14f   : > { %p1239_p1 = pnand %p1238_p10, %p1234_p6 }
 0x151   : > { %1242 = shalt.err (!%p1239_p1)
}
 0x152   : > { %s1339_s12 = smov 64   ;;  %s1340_s30 = smov 4   ;;  %1035 = vst [vmem:[%s1546_s8 + $0x18] sm:$0xff] %v1004_v63   ;;  %1039 = vst [vmem:[%s1546_s8 + $0x38] sm:$0xff] %v1024_v0  }
 0x153   : > { %1062 = dma.vmem_to_hbm [thread:$0]  (%p1457_p13), %s1576_s9, 1024, %s1588_s11, %s672_s1, %s1339_s12, %s1339_s12, %s1340_s30  }
 0x154   : > { %s677_s6 = scalar_lea.sflag [#allocation9], %s1488_s21  ;;  %s1243_s23 = scalar_lea.vmem %s1592_s24, 1024 }
 0x155   : > { %p1244_p8 = scmp.ne.s32.totalorder %s1592_s24, %s1243_s23  ;;  %s1341_s25 = smov [#allocation8]  }
 0x156   : > { %s1247_s27 = sshll.u32 %s1341_s25, 4  ;;  %s1248_s27 = int_to_ptr.vmem [resolvable:$false] %s1247_s27 }
 0x157   : > { %p1245_p12 = pnand %p1244_p8, %p1457_p13  ;;  %s1249_s7 = scalar_lea.vmem %s1248_s27, 2048 }
 0x158   : > { %p1250_p2 = scmp.lt.s32.totalorder %s1592_s24, %s1248_s27  ;;  %p1251_p3 = scmp.lt.s32.totalorder %s1249_s7, %s1243_s23 }
 0x159   : > { %p1246_p0 = pneg %p1245_p12 }
 0x15a   : > { %p1252_p5 = por %p1251_p3, %p1250_p2 }
 0x15c   : > { %p1253_p7 = pnand %p1252_p5, %p1246_p0 }
 0x15e   : > { %1256 = shalt.err (!%p1253_p7)
}
 0x15f   : > { %s1257_s8 = scalar_lea.hbm %s1599_s22, 1024  ;;  %s1261_s11 = scalar_lea.hbm %s1680_s4, 2048 }
 0x160   : > { %p1258_p4 = scmp.ne.s32.totalorder %s1599_s22, %s1257_s8  ;;  %p1262_p11 = scmp.lt.s32.totalorder %s1599_s22, %s1680_s4 }
 0x161   : > { %p1263_p10 = scmp.lt.s32.totalorder %s1261_s11, %s1257_s8 }
 0x162   : > { %p1259_p6 = pnand %p1258_p4, %p1457_p13 }
 0x163   : > { %p1264_p1 = por %p1263_p10, %p1262_p11 }
 0x164   : > { %p1260_p9 = pneg %p1259_p6 }
 0x166   : > { %p1265_p8 = pnand %p1264_p1, %p1260_p9 }
 0x168   : > { %1268 = shalt.err (!%p1265_p8)
}
 0x169   : > { %1063 = dma.vmem_to_hbm [thread:$0]  (%p1457_p13), %s1592_s24, 1024, %s1599_s22, %s677_s6, %s1339_s12, %s1339_s12, %s1340_s30  }
 0x16a PF: > { %s725_s18 = sand.u32 1, %s1311_s15   ;;  %p1698_p12 = scmp.ne.s32.totalorder %s1688_s26, 0 }
 0x16b   : > { %p1699_p0 = scmp.ge.s32.totalorder %s1331_s20, 2  ;;  %s726_s14 = scalar_lea.sflag [#allocation4], %s725_s18 }
 0x16d   : > { %p1075_p2 = pnand %p1699_p0, %p1698_p12 }
 0x16f   : > { %p1076_p3 = pneg %p1075_p2 }
 0x171   : > { %1302 = dma.done.wait (%p1076_p3), %s726_s14, 1024  }
 0x172   : > { %1304 = vsyncadd (%p1076_p3), %s726_s14, 4294966272  ;;  %s735_s29 = scalar_lea.sflag [#allocation9], %s725_s18 }
 0x173   : > { %1306 = dma.done.wait (%p1076_p3), %s735_s29, 1024  }
 0x174   : > { %1308 = vsyncadd (%p1076_p3), %s735_s29, 4294966272  ;;  %s25_s20 = sadd.s32 1, %s1331_s20   ;;  %s1700_s15 = smov %s1315_s16 }
 0x175   : > { %p22_p5 = scmp.ge.s32.totalorder %s25_s20, 4   ;;  %s1701_s16 = smov %s1319_s17 }
 0x176   : > { %s1702_s17 = smov %s1466_s28  ;;  %s1703_s18 = smov %s1327_s19 }
 0x177   : > { %s1704_s19 = smov %s1706_s5  ;;  %24 = sbr.rel (!%p22_p5) target bundleno = 11 (0xb), region = 98 }
 0x17c   :  { %740 = vsyncpa [#allocation3], 1 }
 0x17d   :  { %742 = vsyncpa [#allocation3 + $0x1], 1 }
 0x17e   :  { %743 = vsyncpa [#allocation6], 1 }
 0x17f   :  { %744 = vsyncpa [#allocation4], 1 }
 0x180   :  { %746 = vsyncpa [#allocation4 + $0x1], 1 }
 0x181   :  { %747 = vsyncpa [#allocation9], 1 }
 0x182   :  { %749 = vsyncpa [#allocation9 + $0x1], 1 }

</bundles_post_ra>
